<compile_context>
chip_gen: v6e
topology: v6e:2x2x1
jax: 0.10.0
libtpu: 0.0.40
codegen_flags: <defaults>
</compile_context>

<pallas_src>
import jax
import jax.numpy as jnp
from jax.experimental import pallas as pl
from jax.experimental.pallas import tpu as pltpu

NEG_INF = -1e30  # finite "minus infinity" (avoids inf-inf NaNs on padding)

# Conservative budget for the single-pass VMEM-resident logits block; safe on
# v7x's 64 MiB VMEM (we request a 48 MiB scoped limit on all generations).
SINGLE_PASS_VMEM_BUDGET = 36 * 1024 * 1024
VMEM_LIMIT_BYTES = 48 * 1024 * 1024


def _round_up(x, m):
    return (x + m - 1) // m * m


# --------------------------------------------------------------------------
# Single-pass kernel: grid = (B tiles, V tiles).  Output block (TB, V_pad) is
# pinned across the V axis and acts as the logits buffer; normalized in VMEM.
# --------------------------------------------------------------------------
def cbow_single_pass_kernel(x_ref, w_ref, b_ref, out_ref, m_scr, l_scr):
    # x_ref: (TB, E_pad) bf16   w_ref: (E_pad, TV) bf16   b_ref: (1, TV) f32
    # out_ref: (TB, V_pad) f32  m_scr/l_scr: (TB, 1) f32
    v = pl.program_id(1)
    nv = pl.num_programs(1)
    tv = w_ref.shape[1]

    @pl.when(v == 0)
    def _init():
        m_scr[...] = jnp.full_like(m_scr, NEG_INF)
        l_scr[...] = jnp.zeros_like(l_scr)

    # bf16 x bf16 -> f32 on the MXU; bias add in f32 on the VPU.
    logits = jnp.dot(x_ref[...], w_ref[...],
                     preferred_element_type=jnp.float32)
    logits = logits + b_ref[...]                       # (TB, TV) f32

    # Online logsumexp accumulation across V tiles.
    m_prev = m_scr[...]
    m_new = jnp.maximum(m_prev, jnp.max(logits, axis=1, keepdims=True))
    l_scr[...] = (l_scr[...] * jnp.exp(m_prev - m_new)
                  + jnp.sum(jnp.exp(logits - m_new), axis=1, keepdims=True))
    m_scr[...] = m_new

    # Stash unnormalized logits into the pinned (VMEM-resident) output block.
    col = pl.multiple_of(v * tv, 128)
    out_ref[:, pl.ds(col, tv)] = logits

    @pl.when(v == nv - 1)
    def _finalize():
        lse = m_scr[...] + jnp.log(l_scr[...])
        out_ref[...] = out_ref[...] - lse


# --------------------------------------------------------------------------
# Two-pass fallback for very large vocabularies: grid = (B tiles, pass, V
# tiles).  Pass 0 accumulates logsumexp; pass 1 recomputes logits and writes
# normalized output.  Out index_map (i, v * p) pins the block during pass 0
# so no stale VMEM is ever written back to HBM.
# --------------------------------------------------------------------------
def cbow_two_pass_kernel(x_ref, w_ref, b_ref, out_ref, m_scr, l_scr):
    p = pl.program_id(1)   # 0: accumulate logsumexp, 1: write output
    v = pl.program_id(2)   # V-tile index

    logits = jnp.dot(x_ref[...], w_ref[...],
                     preferred_element_type=jnp.float32)
    logits = logits + b_ref[...]                       # (TB, TV) f32

    @pl.when(jnp.logical_and(p == 0, v == 0))
    def _init():
        m_scr[...] = jnp.full_like(m_scr, NEG_INF)
        l_scr[...] = jnp.zeros_like(l_scr)

    @pl.when(p == 0)
    def _accumulate():
        m_prev = m_scr[...]
        m_new = jnp.maximum(m_prev, jnp.max(logits, axis=1, keepdims=True))
        l_scr[...] = (l_scr[...] * jnp.exp(m_prev - m_new)
                      + jnp.sum(jnp.exp(logits - m_new), axis=1, keepdims=True))
        m_scr[...] = m_new

    @pl.when(p == 1)
    def _finalize():
        lse = m_scr[...] + jnp.log(l_scr[...])
        out_ref[...] = (logits - lse).astype(out_ref.dtype)


# --------------------------------------------------------------------------
# Parameter preparation (hoisted out of the per-call forward path).
# --------------------------------------------------------------------------
def prepare_fc_params(fc_weight, fc_bias, *, tv=2048):
    """fc_weight: (V, E) (PyTorch Linear layout); fc_bias: (V,).
    Returns (w_p, b_p, TV): padded (E_pad, V_pad) bf16 weight, padded (1, V_pad)
    f32 bias (padded vocab columns get NEG_INF so they vanish in the softmax),
    and the V tile size TV used for the padding."""
    V, E = fc_weight.shape
    TV = min(tv, _round_up(V, 128))
    V_pad = _round_up(V, TV)
    E_pad = _round_up(E, 128)
    w_p = jnp.zeros((E_pad, V_pad), jnp.bfloat16).at[:E, :V].set(
        fc_weight.T.astype(jnp.bfloat16))
    b_p = jnp.full((1, V_pad), NEG_INF, jnp.float32).at[0, :V].set(
        fc_bias.astype(jnp.float32))
    return w_p, b_p, TV


def cbow_forward(context_ids, emb_table, w_p, b_p, *, vocab_size, tv_tile,
                 tb=512, single_pass=None):
    """context_ids: (B, W) int32; emb_table: (V, E) f32;
       w_p/b_p/tv_tile: output of prepare_fc_params."""
    B, W = context_ids.shape
    V = vocab_size
    E = emb_table.shape[1]
    E_pad, V_pad = w_p.shape
    TV = tv_tile
    assert V_pad % TV == 0

    # Glue: embedding gather + window sum (left to XLA; never materializes a
    # (B, W, E) tensor inside the kernel).
    # TODO(synk): an in-kernel gather would need PrefetchScalarGridSpec row
    # gathering over the embedding table.
    x = jnp.take(emb_table, context_ids.reshape(-1), axis=0)
    x = x.reshape(B, W, E).sum(axis=1)                       # (B, E) f32

    # B tiling: (8, 128)-aligned; keep >= 2 B tiles when B allows so the
    # "parallel" axis can feed both TensorCores on v7x.
    TB = min(tb, _round_up(B, 8))
    if B >= 16 and _round_up(B, TB) // TB < 2:
        TB = _round_up((B + 1) // 2, 8)
    B_pad = _round_up(B, TB)

    x_p = jnp.zeros((B_pad, E_pad), jnp.bfloat16).at[:B, :E].set(
        x.astype(jnp.bfloat16))

    # VMEM estimate for the single-pass path (double-buffered blocks).
    est = (2 * TB * E_pad * 2          # activations (bf16)
           + 2 * E_pad * TV * 2        # streamed weight (bf16)
           + 2 * TV * 4                # bias
           + 2 * TB * V_pad * 4        # pinned (TB, V_pad) f32 output block
           + 4 * TB * 4)               # m/l scratch
    if single_pass is None:
        single_pass = est <= SINGLE_PASS_VMEM_BUDGET

    if single_pass:
        grid = (B_pad // TB, V_pad // TV)
        out = pl.pallas_call(
            cbow_single_pass_kernel,
            out_shape=jax.ShapeDtypeStruct((B_pad, V_pad), jnp.float32),
            grid=grid,
            in_specs=[
                pl.BlockSpec((TB, E_pad), lambda i, v: (i, 0)),   # activations
                pl.BlockSpec((E_pad, TV), lambda i, v: (0, v)),   # weight tile
                pl.BlockSpec((1, TV),     lambda i, v: (0, v)),   # bias tile
            ],
            # Pinned across the V axis: single HBM writeback per B tile.
            out_specs=pl.BlockSpec((TB, V_pad), lambda i, v: (i, 0)),
            scratch_shapes=[
                pltpu.VMEM((TB, 1), jnp.float32),   # running max
                pltpu.VMEM((TB, 1), jnp.float32),   # running sum(exp)
            ],
            compiler_params=pltpu.CompilerParams(
                dimension_semantics=("parallel", "arbitrary"),
                vmem_limit_bytes=VMEM_LIMIT_BYTES),
        )(x_p, w_p, b_p)
    else:
        grid = (B_pad // TB, 2, V_pad // TV)   # (B tiles, pass, V tiles)
        out = pl.pallas_call(
            cbow_two_pass_kernel,
            out_shape=jax.ShapeDtypeStruct((B_pad, V_pad), jnp.float32),
            grid=grid,
            in_specs=[
                pl.BlockSpec((TB, E_pad), lambda i, p, v: (i, 0)),
                pl.BlockSpec((E_pad, TV), lambda i, p, v: (0, v)),
                pl.BlockSpec((1, TV),     lambda i, p, v: (0, v)),
            ],
            # Pass 0 stays pinned on block (i, 0) -> no stale writebacks.
            out_specs=pl.BlockSpec((TB, TV), lambda i, p, v: (i, v * p)),
            scratch_shapes=[
                pltpu.VMEM((TB, 1), jnp.float32),
                pltpu.VMEM((TB, 1), jnp.float32),
            ],
            compiler_params=pltpu.CompilerParams(
                dimension_semantics=("parallel", "arbitrary", "arbitrary"),
                vmem_limit_bytes=VMEM_LIMIT_BYTES),
        )(x_p, w_p, b_p)

    return out[:B, :V]


if __name__ == "__main__":
    # Small shapes consistent with the module (emb=128, window=10).
    batch_size = 128
    window_size = 10
    embedding_size = 128
    vocab_size = 500   # not a multiple of 128 -> exercises V padding/tiling

    key = jax.random.PRNGKey(0)
    k_emb, k_w, k_b, k_idx = jax.random.split(key, 4)

    # nn.Embedding weight, re-initialized uniform(-initrange, initrange)
    initrange = 0.5 / embedding_size
    emb_table = jax.random.uniform(
        k_emb, (vocab_size, embedding_size), jnp.float32,
        minval=-initrange, maxval=initrange)

    # nn.Linear(embedding_size, vocab_size): weight (V, E), bias (V,)
    bound = 1.0 / (embedding_size ** 0.5)
    fc_weight = jax.random.uniform(
        k_w, (vocab_size, embedding_size), jnp.float32,
        minval=-bound, maxval=bound)
    fc_bias = jax.random.uniform(
        k_b, (vocab_size,), jnp.float32, minval=-bound, maxval=bound)

    # Context word indices: (B, W) int32 in [0, vocab_size)
    context = jax.random.randint(
        k_idx, (batch_size, window_size), 0, vocab_size, dtype=jnp.int32)

    # Pure-JAX f32 reference.
    x_sum = jnp.take(emb_table, context.reshape(-1), axis=0)
    x_sum = x_sum.reshape(batch_size, window_size, embedding_size).sum(axis=1)
    ref = jax.nn.log_softmax(x_sum @ fc_weight.T + fc_bias, axis=1)

    def check(out, name):
        out = jax.block_until_ready(out)
        assert out.shape == (batch_size, vocab_size), name
        row_sums = jnp.exp(out).sum(axis=1)
        assert bool(jnp.allclose(row_sums, 1.0, atol=1e-4)), f"{name}: row sums off"
        assert bool(jnp.allclose(out, ref, atol=5e-3)), f"{name}: mismatch vs reference"

    # 1) Default fast path: single-pass, large tiles, weights prepared once.
    w_p, b_p, tv_tile = prepare_fc_params(fc_weight, fc_bias, tv=2048)
    out = cbow_forward(context, emb_table, w_p, b_p,
                       vocab_size=vocab_size, tv_tile=tv_tile, tb=512)
    check(out, "single_pass_default")

    # 2) Single-pass with multiple B and V tiles (exercises the online
    #    logsumexp + dynamic logits stash into the pinned output block).
    w_s, b_s, tv_s = prepare_fc_params(fc_weight, fc_bias, tv=128)
    out = cbow_forward(context, emb_table, w_s, b_s,
                       vocab_size=vocab_size, tv_tile=tv_s, tb=64,
                       single_pass=True)
    check(out, "single_pass_tiled")

    # 3) Two-pass fallback (forced): the large-vocab path with the fixed
    #    (i, v*p) output index_map (no stale pass-0 writebacks).
    out = cbow_forward(context, emb_table, w_s, b_s,
                       vocab_size=vocab_size, tv_tile=tv_s, tb=64,
                       single_pass=False)
    check(out, "two_pass_fallback")

    print("KERNEL_OK")
</pallas_src>

<mosaic_0001>
module attributes {stable_mosaic.version = 11 : i64} {
  func.func @cbow_single_pass_kernel(%arg0: i32, %arg1: i32, %arg2: memref<64x128xbf16, #tpu.memory_space<vmem>>, %arg3: memref<128x512xbf16, #tpu.memory_space<vmem>>, %arg4: memref<1x512xf32, #tpu.memory_space<vmem>>, %arg5: memref<64x512xf32, #tpu.memory_space<vmem>>, %arg6: memref<64x1xf32, #tpu.memory_space<vmem>>, %arg7: memref<64x1xf32, #tpu.memory_space<vmem>>) attributes {dimension_semantics = [#tpu.dimension_semantics<parallel>, #tpu.dimension_semantics<arbitrary>], iteration_bounds = array<i64: 2, 1>, scalar_prefetch = 0 : i64, scratch_operands = 2 : i64, tpu.core_type = #tpu.core_type<tc>, window_params = [{transform_indices = @transform_0, window_bounds = array<i64: 64, 128>}, {transform_indices = @transform_1, window_bounds = array<i64: 128, 512>}, {transform_indices = @transform_2, window_bounds = array<i64: 1, 512>}, {transform_indices = @transform_3, window_bounds = array<i64: 64, 512>}]} {
    %c0_i32 = arith.constant 0 : i32
    %0 = arith.cmpi eq, %arg1, %c0_i32 : i32
    %1 = arith.extui %0 : i1 to i32
    %c0_i32_0 = arith.constant 0 : i32
    %2 = arith.cmpi ne, %1, %c0_i32_0 : i32
    scf.if %2 {
      %cst_19 = arith.constant -1.000000e+30 : f32
      %32 = vector.broadcast %cst_19 : f32 to vector<64x1xf32>
      %c0_20 = arith.constant 0 : index
      %c0_21 = arith.constant 0 : index
      %33 = vector.load %arg6[%c0_20, %c0_21] : memref<64x1xf32, #tpu.memory_space<vmem>>, vector<64x1xf32>
      tpu.vector_store %arg6[%c0_20, %c0_21], %32 {strides = array<i32>} : memref<64x1xf32, #tpu.memory_space<vmem>>, vector<64x1xf32>,
      %cst_22 = arith.constant 0.000000e+00 : f32
      %34 = vector.broadcast %cst_22 : f32 to vector<64x1xf32>
      %c0_23 = arith.constant 0 : index
      %c0_24 = arith.constant 0 : index
      %35 = vector.load %arg7[%c0_23, %c0_24] : memref<64x1xf32, #tpu.memory_space<vmem>>, vector<64x1xf32>
      tpu.vector_store %arg7[%c0_23, %c0_24], %34 {strides = array<i32>} : memref<64x1xf32, #tpu.memory_space<vmem>>, vector<64x1xf32>,
    } else {
    }
    %c0 = arith.constant 0 : index
    %c0_1 = arith.constant 0 : index
    %3 = vector.load %arg2[%c0, %c0_1] : memref<64x128xbf16, #tpu.memory_space<vmem>>, vector<64x128xbf16>
    %c0_2 = arith.constant 0 : index
    %c0_3 = arith.constant 0 : index
    %4 = vector.load %arg3[%c0_2, %c0_3] : memref<128x512xbf16, #tpu.memory_space<vmem>>, vector<128x512xbf16>
    %cst = arith.constant dense<0.000000e+00> : vector<64x512xf32>
    %5 = tpu.matmul %3, %4, %cst {dimension_numbers = #tpu.dot_dimension_numbers<[1], [0], [0], [1], [0, 0, 1, 1], [], []>} : vector<64x128xbf16>, vector<128x512xbf16>, vector<64x512xf32> -> vector<64x512xf32>
    %c0_4 = arith.constant 0 : index
    %c0_5 = arith.constant 0 : index
    %6 = vector.load %arg4[%c0_4, %c0_5] : memref<1x512xf32, #tpu.memory_space<vmem>>, vector<1x512xf32>
    %7 = vector.broadcast %6 : vector<1x512xf32> to vector<64x512xf32>
    %8 = arith.addf %5, %7 : vector<64x512xf32>
    %c0_6 = arith.constant 0 : index
    %c0_7 = arith.constant 0 : index
    %9 = vector.load %arg6[%c0_6, %c0_7] : memref<64x1xf32, #tpu.memory_space<vmem>>, vector<64x1xf32>
    %cst_8 = arith.constant dense<0xFF800000> : vector<64xf32>
    %10 = vector.multi_reduction <maximumf>, %8, %cst_8 [1] : vector<64x512xf32> to vector<64xf32>
    %11 = vector.shape_cast %10 : vector<64xf32> to vector<64x1xf32>
    %12 = arith.maximumf %9, %11 : vector<64x1xf32>
    %c0_9 = arith.constant 0 : index
    %c0_10 = arith.constant 0 : index
    %13 = vector.load %arg7[%c0_9, %c0_10] : memref<64x1xf32, #tpu.memory_space<vmem>>, vector<64x1xf32>
    %14 = arith.subf %9, %12 : vector<64x1xf32>
    %15 = math.exp %14 : vector<64x1xf32>
    %16 = arith.mulf %13, %15 : vector<64x1xf32>
    %17 = vector.broadcast %12 : vector<64x1xf32> to vector<64x512xf32>
    %18 = arith.subf %8, %17 : vector<64x512xf32>
    %19 = math.exp %18 : vector<64x512xf32>
    %cst_11 = arith.constant dense<0.000000e+00> : vector<64xf32>
    %20 = vector.multi_reduction <add>, %19, %cst_11 [1] : vector<64x512xf32> to vector<64xf32>
    %21 = vector.shape_cast %20 : vector<64xf32> to vector<64x1xf32>
    %22 = arith.addf %16, %21 : vector<64x1xf32>
    %c0_12 = arith.constant 0 : index
    %c0_13 = arith.constant 0 : index
    %23 = vector.load %arg7[%c0_12, %c0_13] : memref<64x1xf32, #tpu.memory_space<vmem>>, vector<64x1xf32>
    tpu.vector_store %arg7[%c0_12, %c0_13], %22 {strides = array<i32>} : memref<64x1xf32, #tpu.memory_space<vmem>>, vector<64x1xf32>,
    %c0_14 = arith.constant 0 : index
    %c0_15 = arith.constant 0 : index
    %24 = vector.load %arg6[%c0_14, %c0_15] : memref<64x1xf32, #tpu.memory_space<vmem>>, vector<64x1xf32>
    tpu.vector_store %arg6[%c0_14, %c0_15], %12 {strides = array<i32>} : memref<64x1xf32, #tpu.memory_space<vmem>>, vector<64x1xf32>,
    %c512_i32 = arith.constant 512 : i32
    %25 = arith.muli %arg1, %c512_i32 : i32
    %26 = tpu.assume_multiple %25, 128 : i32
    %c0_16 = arith.constant 0 : index
    %27 = arith.index_cast %26 : i32 to index
    %28 = vector.load %arg5[%c0_16, %27] : memref<64x512xf32, #tpu.memory_space<vmem>>, vector<64x512xf32>
    tpu.vector_store %arg5[%c0_16, %27], %8 {strides = array<i32>} : memref<64x512xf32, #tpu.memory_space<vmem>>, vector<64x512xf32>,
    %c0_i32_17 = arith.constant 0 : i32
    %29 = arith.cmpi eq, %arg1, %c0_i32_17 : i32
    %30 = arith.extui %29 : i1 to i32
    %c0_i32_18 = arith.constant 0 : i32
    %31 = arith.cmpi ne, %30, %c0_i32_18 : i32
    scf.if %31 {
      %c0_19 = arith.constant 0 : index
      %c0_20 = arith.constant 0 : index
      %32 = vector.load %arg6[%c0_19, %c0_20] : memref<64x1xf32, #tpu.memory_space<vmem>>, vector<64x1xf32>
      %c0_21 = arith.constant 0 : index
      %c0_22 = arith.constant 0 : index
      %33 = vector.load %arg7[%c0_21, %c0_22] : memref<64x1xf32, #tpu.memory_space<vmem>>, vector<64x1xf32>
      %34 = math.log %33 : vector<64x1xf32>
      %35 = arith.addf %32, %34 : vector<64x1xf32>
      %c0_23 = arith.constant 0 : index
      %c0_24 = arith.constant 0 : index
      %36 = vector.load %arg5[%c0_23, %c0_24] : memref<64x512xf32, #tpu.memory_space<vmem>>, vector<64x512xf32>
      %37 = vector.broadcast %35 : vector<64x1xf32> to vector<64x512xf32>
      %38 = arith.subf %36, %37 : vector<64x512xf32>
      %c0_25 = arith.constant 0 : index
      %c0_26 = arith.constant 0 : index
      %39 = vector.load %arg5[%c0_25, %c0_26] : memref<64x512xf32, #tpu.memory_space<vmem>>, vector<64x512xf32>
      tpu.vector_store %arg5[%c0_25, %c0_26], %38 {strides = array<i32>} : memref<64x512xf32, #tpu.memory_space<vmem>>, vector<64x512xf32>,
    } else {
    }
    return
  }
  func.func @transform_0(%arg0: i32, %arg1: i32) -> (i32, i32) {
    %c0_i32 = arith.constant 0 : i32
    %c0_i32_0 = arith.constant 0 : i32
    return %arg0, %c0_i32 : i32, i32
  }
  func.func @transform_1(%arg0: i32, %arg1: i32) -> (i32, i32) {
    %c0_i32 = arith.constant 0 : i32
    %c0_i32_0 = arith.constant 0 : i32
    return %c0_i32, %arg1 : i32, i32
  }
  func.func @transform_2(%arg0: i32, %arg1: i32) -> (i32, i32) {
    %c0_i32 = arith.constant 0 : i32
    %c0_i32_0 = arith.constant 0 : i32
    return %c0_i32, %arg1 : i32, i32
  }
  func.func @transform_3(%arg0: i32, %arg1: i32) -> (i32, i32) {
    %c0_i32 = arith.constant 0 : i32
    %c0_i32_0 = arith.constant 0 : i32
    return %arg0, %c0_i32 : i32, i32
  }
}

</mosaic_0001>

<bundles_post_ra>
// kernel: tpu_custom_call.1
= control target key start
LH: loop header
LB: loop body
LE: loop exit
PB: predicated region body
PF: predicated region fallthrough
CT: control target
= control target key end

     0   :  { %8 = vsyncpa [#allocation5], 0  ;;  %s2364_s0 = inlined_call_operand.hbm [shape: bf16[128,128], index: 0, kind: input, shape index: {}]   ;;  %s2365_s1 = inlined_call_operand.hbm [shape: bf16[128,512], index: 1, kind: input, shape index: {}]   ;;  %s2366_s2 = inlined_call_operand.hbm [shape: f32[1,512], index: 2, kind: input, shape index: {}]   ;;  %s2367_s3 = inlined_call_operand.hbm [shape: f32[128,512], index: 3, kind: output, shape index: {}]  }
   0x1   :  { %10 = vsyncpa [#allocation5 + $0x1], 0 }
   0x2   :  { %11 = vsyncpa [#allocation8], 0 }
   0x3   :  { %12 = vsyncpa [#allocation6], 0 }
   0x4   :  { %14 = vsyncpa [#allocation6 + $0x1], 0  ;;  %s1796_s12 = smov 0   ;;  %s1798_s13 = smov 0  }
   0x5   :  { %s1800_s14 = smov 0   ;;  %s1802_s15 = smov 0  }
   0x6   :  { %s1804_s16 = smov 0   ;;  %s1806_s17 = smov 0  }
   0x7 LB: > { %s1296_s18 = sadd.s32 4294967295, %s1761_s17   ;;  %s1297_s19 = sadd.s32 4294967294, %s1761_s17   ;;  %s1761_s17 = sphi %s1806_s17, %s20_s17   ;;  %s1757_s16 = sphi %s1804_s16, %s2422_s16   ;;  %s1753_s15 = sphi %s1802_s15, %s2421_s15   ;;  %s1749_s14 = sphi %s1800_s14, %s2420_s14   ;;  %s1745_s13 = sphi %s1798_s13, %s2419_s13   ;;  %s1741_s12 = sphi %s1796_s12, %s2418_s12  }
   0x8   : > { %p52_p0 = scmp.ne.s32.totalorder %s1745_s13, %s1741_s12  ;;  %p1830_p1 = scmp.eq.s32.totalorder %s1296_s18, 0 }
   0x9   : > { %p1834_p2 = scmp.eq.s32.totalorder %s1296_s18, 1  ;;  %p134_p3 = scmp.eq.s32.totalorder %s1297_s19, 1 }
   0xa   : > { %s2380_s20 = scalar_select %p1830_p1, 1, 0 }
   0xb   : > { %p1840_p4 = por %p1830_p1, %p52_p0  ;;  %p1298_p5 = scmp.ge.s32.totalorder %s1761_s17, 1 }
   0xc   : > { %p1845_p6 = por %p134_p3, %p52_p0  ;;  %p141_p7 = scmp.lt.s32.totalorder %s1761_s17, 3 }
   0xd   : > { %s2382_s22 = scalar_select %p1840_p4, 1, 0 }
   0xe   : > { %s2383_s23 = scalar_select %p1845_p6, 1, 0 }
   0xf   : > { %p1850_p8 = pnand %p1298_p5, %p141_p7  ;;  %s1763_s25 = smov [#allocation7]  }
  0x10   : > { %s156_s26 = sshll.u32 %s1763_s25, 4  ;;  %s1764_s28 = smov [#allocation9]   ;;  %s157_s26 = int_to_ptr.vmem [resolvable:$true] %s156_s26 }
  0x11   : > { %p1367_p9 = pneg %p1850_p8  ;;  %s173_s29 = sshll.u32 %s1764_s28, 4  ;;  %s174_s29 = int_to_ptr.vmem [resolvable:$true] %s173_s29 }
  0x12   : > { %s1608_s30 = scalar_lea.vmem %s157_s26, 4096  ;;  %p1616_p5 = scmp.lt.s32.totalorder %s157_s26, %s157_s26 }
  0x13   : > { %p1859_p11 = pnand %p1367_p9, %p1830_p1  ;;  %p1609_p13 = scmp.ne.s32.totalorder %s157_s26, %s1608_s30 }
  0x14   : > { %p1617_p7 = scmp.lt.s32.totalorder %s1608_s30, %s1608_s30 }
  0x15   : > { %p1599_p12 = pneg %p1859_p11 }
  0x16   : > { %p1618_p10 = por %p1617_p7, %p1616_p5 }
  0x17   : > { %p1611_p0 = pnand %p1609_p13, %p1599_p12 }
  0x19   : > { %p1612_p3 = pneg %p1611_p0 }
  0x1b   : > { %p1619_p9 = pnand %p1618_p10, %p1612_p3 }
  0x1d   : > { %1622 = shalt.err (!%p1619_p9)
}
  0x1e   : > { %s1765_s4 = smov 256   ;;  %s1766_s5 = smov 16  }
  0x1f   : > { %1370 = dma.hbm_to_vmem [thread:$0]  (!%p1859_p11), %s2365_s1, 4096, %s157_s26, [#allocation8], %s1765_s4, %s1765_s4, %s1766_s5  }
  0x20   : > { %s1634_s8 = scalar_lea.vmem %s174_s29, 64  ;;  %p1642_p1 = scmp.lt.s32.totalorder %s174_s29, %s174_s29 }
  0x21   : > { %p1635_p6 = scmp.ne.s32.totalorder %s174_s29, %s1634_s8  ;;  %p1643_p4 = scmp.lt.s32.totalorder %s1634_s8, %s1634_s8 }
  0x23   : > { %p1637_p13 = pnand %p1635_p6, %p1599_p12  ;;  %p1644_p5 = por %p1643_p4, %p1642_p1 }
  0x25   : > { %p1638_p0 = pneg %p1637_p13 }
  0x27   : > { %p1645_p10 = pnand %p1644_p5, %p1638_p0 }
  0x29   : > { %1648 = shalt.err (!%p1645_p10)
}
  0x2a   : > { %1373 = dma.hbm_to_vmem [thread:$0]  (!%p1859_p11), %s2366_s2, 64, %s174_s29, [#allocation8]  }
  0x2b   : > { %s32_s11 = sadd.s32 1, %s1757_s16  ;;  %s39_s18 = sadd.s32 1, %s1749_s14 }
  0x2c   : > { %p34_p1 = scmp.ge.s32.totalorder %s32_s11, 2  ;;  %p46_p4 = scmp.ne.s32.totalorder %s1749_s14, %s1745_s13 }
  0x2d   : > { %p47_p6 = scmp.eq.s32.totalorder %s1761_s17, 0  ;;  %p1384_p12 = scmp.lt.s32.totalorder %s1761_s17, 2 }
  0x2e   : > { %s2424_s11 = smov (%p34_p1, %s32_s11), 0  ;;  %p1891_p7 = por %p1834_p2, %p46_p4 }
  0x2f   : > { %p48_p3 = por %p47_p6, %p46_p4  ;;  %s36_s25 = ssub.s32 %s1757_s16, %s2424_s11 }
  0x30   : > { %s184_s26 = sand.u32 1, %s1749_s14   ;;  %p37_p9 = scmp.eq.s32.totalorder %s36_s25, 0 }
  0x31   : > { %s1302_s27 = sshll.u32 %s184_s26, 5  ;;  %s1352_s28 = sshll.u32 %s1757_s16, 9 }
  0x32   : > { %s1900_s29 = scalar_select %p37_p9, %s1749_s14, %s39_s18  }
  0x33   : > { %s194_s5 = scalar_lea.hbm %s2364_s0, %s1352_s28  ;;  %s188_s6 = scalar_lea.vmem [#allocation4], %s1302_s27 }
  0x34   : > { %s195_s7 = sshll.u32 %s188_s6, 4  ;;  %p1907_p11 = pnand %p1384_p12, %p48_p3  ;;  %s196_s7 = int_to_ptr.vmem [resolvable:$true] %s195_s7 }
  0x35   : > { %s185_s8 = scalar_lea.sflag [#allocation5], %s184_s26  ;;  %s1662_s9 = scalar_lea.vmem %s196_s7, 512 }
  0x36   : > { %p1651_p2 = pneg %p1907_p11  ;;  %p1663_p13 = scmp.ne.s32.totalorder %s196_s7, %s1662_s9 }
  0x37   : > { %s1767_s10 = smov [#allocation4]  }
  0x38   : > { %p1665_p0 = pnand %p1663_p13, %p1651_p2  ;;  %s1667_s18 = sshll.u32 %s1767_s10, 4  ;;  %s1668_s18 = int_to_ptr.vmem [resolvable:$false] %s1667_s18 }
  0x39   : > { %s1669_s25 = scalar_lea.vmem %s1668_s18, 1024  ;;  %p1670_p10 = scmp.lt.s32.totalorder %s196_s7, %s1668_s18 }
  0x3a   : > { %p1666_p5 = pneg %p1665_p0  ;;  %p1671_p1 = scmp.lt.s32.totalorder %s1669_s25, %s1662_s9 }
  0x3c   : > { %p1672_p4 = por %p1671_p1, %p1670_p10 }
  0x3e   : > { %p1673_p6 = pnand %p1672_p4, %p1666_p5 }
  0x40   : > { %1676 = shalt.err (!%p1673_p6)
}
  0x41   : > { %s1768_s27 = smov 64   ;;  %s1769_s28 = smov 4  }
  0x42   : > { %1377 = dma.hbm_to_vmem [thread:$0]  (!%p1907_p11), %s194_s5, 512, %s196_s7, %s185_s8, %s1768_s27, %s1768_s27, %s1769_s28  }
  0x43   : > { %207 = sbr.rel (%p1850_p8) target bundleno = 941 (0x3ad), region = 32 }
  0x48   : > { %s1918_s26 = sand.u32 1, %s1745_s13   ;;  %p2388_p12 = scmp.ne.s32.totalorder %s2382_s22, 0 }
  0x49   : > { %s1306_s30 = sshll.u32 %s1918_s26, 5  ;;  %s210_s4 = scalar_lea.sflag [#allocation5], %s1918_s26 }
  0x4a   : > { %s1922_s6 = scalar_lea.vmem [#allocation4], %s1306_s30 }
  0x4b   : > { %1728 = dma.done.wait (%p2388_p12), %s210_s4, 512  }
  0x4c   : > { %1730 = vsyncadd (%p2388_p12), %s210_s4, 4294966784  ;;  %p2389_p3 = scmp.ne.s32.totalorder %s2380_s20, 0 }
  0x4e   : > { %1732 = dma.done.wait (%p2389_p3), [#allocation8], 4160  }
  0x4f   : > { %1734 = vsyncadd (%p2389_p3), [#allocation8], 4294963136  ;;  %v1770_v0 = vmov 0   ;;  %v1449_v1 = vld [vmem:[#allocation7 + $0xe4] ss:$16 sps:$4 sm:$0xff]   ;;  %v1498_v34 = vld [vmem:[%s1922_s6 + $0x8] sm:$0xff]   ;;  %v312_v38 = vlaneseq }
  0x50   : > { %548 = vmatprep.mubr.bf16.mxu0 %v1770_v0  ;;  %621 = vmatprep.mubr.bf16.mxu1 %v1770_v0  ;;  %v1451_v2 = vld [vmem:[#allocation7 + $0xec] ss:$16 sps:$4 sm:$0xff]   ;;  %v1453_v3 = vld [vmem:[#allocation7 + $0xe0] ss:$16 sps:$4 sm:$0xff]   ;;  %v1454_v4 = vld [vmem:[#allocation7 + $0xe8] ss:$16 sps:$4 sm:$0xff]  }
  0x51   : > { %1447 = vset.pattern.permute.xlu0 %v1770_v0  ;;  %1448 = vset.pattern.permute.xlu1 %v1770_v0  ;;  %v1455_v5 = vld [vmem:[#allocation7 + $0xc4] ss:$16 sps:$4 sm:$0xff]   ;;  %v1457_v6 = vld [vmem:[#allocation7 + $0xcc] ss:$16 sps:$4 sm:$0xff]   ;;  %v1459_v7 = vld [vmem:[#allocation7 + $0xc0] ss:$16 sps:$4 sm:$0xff]  }
  0x52   : > { %516 = vmatprep.subr.bf16.mxu0 %v1449_v1  ;;  %589 = vmatprep.subr.bf16.mxu1 %v1451_v2  ;;  %v1460_v8 = vld [vmem:[#allocation7 + $0xc8] ss:$16 sps:$4 sm:$0xff]   ;;  %v1461_v9 = vld [vmem:[#allocation7 + $0xa4] ss:$16 sps:$4 sm:$0xff]   ;;  %v1463_v10 = vld [vmem:[#allocation7 + $0xac] ss:$16 sps:$4 sm:$0xff]  }
  0x53   : > { %517 = vmatpush1.bf16.msra.mxu0 %v1453_v3  ;;  %590 = vmatpush1.bf16.msra.mxu1 %v1454_v4  ;;  %v1465_v11 = vld [vmem:[#allocation7 + $0xa0] ss:$16 sps:$4 sm:$0xff]   ;;  %v1466_v12 = vld [vmem:[#allocation7 + $0xa8] ss:$16 sps:$4 sm:$0xff]   ;;  %v1467_v13 = vld [vmem:[#allocation7 + $0x84] ss:$16 sps:$4 sm:$0xff]  }
  0x54   : > { %518 = vmatprep.subr.bf16.mxu0 %v1455_v5  ;;  %591 = vmatprep.subr.bf16.mxu1 %v1457_v6  ;;  %v1469_v14 = vld [vmem:[#allocation7 + $0x8c] ss:$16 sps:$4 sm:$0xff]   ;;  %v1471_v15 = vld [vmem:[#allocation7 + $0x80] ss:$16 sps:$4 sm:$0xff]   ;;  %v1472_v16 = vld [vmem:[#allocation7 + $0x88] ss:$16 sps:$4 sm:$0xff]  }
  0x55   : > { %v1473_v17 = vld [vmem:[#allocation7 + $0x64] ss:$16 sps:$4 sm:$0xff]   ;;  %v1475_v18 = vld [vmem:[#allocation7 + $0x6c] ss:$16 sps:$4 sm:$0xff]   ;;  %v1477_v19 = vld [vmem:[#allocation7 + $0x60] ss:$16 sps:$4 sm:$0xff]  }
  0x56   : > { %v1478_v20 = vld [vmem:[#allocation7 + $0x68] ss:$16 sps:$4 sm:$0xff]   ;;  %v1479_v21 = vld [vmem:[#allocation7 + $0x44] ss:$16 sps:$4 sm:$0xff]   ;;  %v1481_v22 = vld [vmem:[#allocation7 + $0x4c] ss:$16 sps:$4 sm:$0xff]  }
  0x57   : > { %519 = vmatpush1.bf16.msra.mxu0 %v1459_v7  ;;  %592 = vmatpush1.bf16.msra.mxu1 %v1460_v8  ;;  %v1483_v23 = vld [vmem:[#allocation7 + $0x40] ss:$16 sps:$4 sm:$0xff]   ;;  %v1484_v24 = vld [vmem:[#allocation7 + $0x48] ss:$16 sps:$4 sm:$0xff]   ;;  %v1485_v25 = vld [vmem:[#allocation7 + $0x24] ss:$16 sps:$4 sm:$0xff]  }
  0x58   : > { %520 = vmatprep.subr.bf16.mxu0 %v1461_v9  ;;  %593 = vmatprep.subr.bf16.mxu1 %v1463_v10  ;;  %v1487_v26 = vld [vmem:[#allocation7 + $0x2c] ss:$16 sps:$4 sm:$0xff]   ;;  %v1489_v27 = vld [vmem:[#allocation7 + $0x20] ss:$16 sps:$4 sm:$0xff]   ;;  %v1490_v28 = vld [vmem:[#allocation7 + $0x28] ss:$16 sps:$4 sm:$0xff]  }
  0x59   : > { %v1491_v29 = vld [vmem:[#allocation7 + $0x4] ss:$16 sps:$4 sm:$0xff]   ;;  %v1493_v30 = vld [vmem:[#allocation7 + $0xc] ss:$16 sps:$4 sm:$0xff]   ;;  %v1495_v31 = vld [vmem:[#allocation7] ss:$16 sps:$4 sm:$0xff]  }
  0x5a   : > { %v1496_v32 = vld [vmem:[#allocation7 + $0x8] ss:$16 sps:$4 sm:$0xff]   ;;  %v1497_v33 = vld [vmem:[%s1922_s6] sm:$0xff]   ;;  %v1499_v35 = vld [vmem:[%s1922_s6 + $0x10] sm:$0xff]   ;;  %vm253_vm0 = vcmask 7168   ;;  %v313_v39 = vshrl.u32 %v312_v38, 7 }
  0x5b   : > { %521 = vmatpush1.bf16.msra.mxu0 %v1465_v11  ;;  %594 = vmatpush1.bf16.msra.mxu1 %v1466_v12  ;;  %v1500_v36 = vld [vmem:[%s1922_s6 + $0x18] sm:$0xff]   ;;  %v1771_v37 = vmov -1e+30   ;;  %v310_v43 = vld [vmem:[#allocation9] sm:$0xf]  ;;  %s1309_s20 = sshll.u32 %s1918_s26, 8 }
  0x5c   : > { %522 = vmatprep.subr.bf16.mxu0 %v1467_v13  ;;  %595 = vmatprep.subr.bf16.mxu1 %v1469_v14  ;;  %254 = vst.msk [vmem:[#allocation2] sm:$0xff] %vm253_vm0, %v1771_v37  ;;  %255 = vst.msk [vmem:[#allocation2 + $0x8] sm:$0xff] %vm253_vm0, %v1771_v37  ;;  %v314_v40 = vsub.s32 0, %v313_v39  ;;  %v322_v41 = vsub.s32 2, %v313_v39  ;;  %v318_v42 = vsub.s32 1, %v313_v39  ;;  %v326_v47 = vsub.s32 3, %v313_v39 }
  0x5d   : > { %256 = vst.msk [vmem:[#allocation2 + $0x10] sm:$0xff] %vm253_vm0, %v1771_v37  ;;  %257 = vst.msk [vmem:[#allocation2 + $0x18] sm:$0xff] %vm253_vm0, %v1771_v37  ;;  %s2247_s22 = scalar_lea.vmem [#allocation10], %s1309_s20  ;;  %s1354_s24 = sshll.u32 %s1753_s15, 12 }
  0x5e   : > { %258 = vst.msk [vmem:[#allocation2 + $0x20] sm:$0xff] %vm253_vm0, %v1771_v37  ;;  %259 = vst.msk [vmem:[#allocation2 + $0x28] sm:$0xff] %vm253_vm0, %v1771_v37  ;;  %v1954_v44 = vrot.slane %v310_v43, %v314_v40  ;;  %v1956_v45 = vrot.slane %v310_v43, %v322_v41  ;;  %v1958_v46 = vrot.slane %v310_v43, %v318_v42  ;;  %s1190_s5 = sshll.u32 %s2247_s22, 4  ;;  %s2306_s8 = scalar_lea.hbm %s2367_s3, %s1354_s24  ;;  %s2308_s5 = int_to_ptr.vmem [resolvable:$true] %s1190_s5 }
  0x5f   : > { %523 = vmatpush1.bf16.msra.mxu0 %v1471_v15  ;;  %596 = vmatpush1.bf16.msra.mxu1 %v1472_v16  ;;  %260 = vst.msk [vmem:[#allocation2 + $0x30] sm:$0xff] %vm253_vm0, %v1771_v37  ;;  %261 = vst.msk [vmem:[#allocation2 + $0x38] sm:$0xff] %vm253_vm0, %v1771_v37  ;;  %v1969_v55 = vrot.slane %v310_v43, %v326_v47  ;;  %s1176_s15 = scalar_lea.sflag [#allocation6], %s1918_s26  ;;  %s1677_s9 = scalar_lea.vmem %s2308_s5, 4096 }
  0x60   : > { %524 = vmatprep.subr.bf16.mxu0 %v1473_v17  ;;  %597 = vmatprep.subr.bf16.mxu1 %v1475_v18  ;;  %p1678_p8 = scmp.ne.s32.totalorder %s2308_s5, %s1677_s9  ;;  %s1773_s10 = smov [#allocation10]  }
  0x61   : > { %s1681_s18 = sshll.u32 %s1773_s10, 4  ;;  %s1682_s18 = int_to_ptr.vmem [resolvable:$false] %s1681_s18 }
  0x62   : > { %p1679_p9 = pnand %p1678_p8, %p1891_p7  ;;  %s1683_s25 = scalar_lea.vmem %s1682_s18, 8192 }
  0x63   : > { %525 = vmatpush1.bf16.msra.mxu0 %v1477_v19  ;;  %598 = vmatpush1.bf16.msra.mxu1 %v1478_v20  ;;  %p1684_p2 = scmp.lt.s32.totalorder %s2308_s5, %s1682_s18  ;;  %p1685_p13 = scmp.lt.s32.totalorder %s1683_s25, %s1677_s9 }
  0x64   : > { %526 = vmatprep.subr.bf16.mxu0 %v1479_v21  ;;  %599 = vmatprep.subr.bf16.mxu1 %v1481_v22  ;;  %p1680_p11 = pneg %p1679_p9 }
  0x65   : > { %p1686_p0 = por %p1685_p13, %p1684_p2 }
  0x67   : > { %527 = vmatpush1.bf16.msra.mxu0 %v1483_v23  ;;  %600 = vmatpush1.bf16.msra.mxu1 %v1484_v24  ;;  %p1687_p5 = pnand %p1686_p0, %p1680_p11 }
  0x68   : > { %528 = vmatprep.subr.bf16.mxu0 %v1485_v25  ;;  %601 = vmatprep.subr.bf16.mxu1 %v1487_v26 }
  0x6b   : > { %529 = vmatpush1.bf16.msra.mxu0 %v1489_v27  ;;  %602 = vmatpush1.bf16.msra.mxu1 %v1490_v28 }
  0x6c   : > { %530 = vmatprep.subr.bf16.mxu0 %v1491_v29  ;;  %603 = vmatprep.subr.bf16.mxu1 %v1493_v30 }
  0x6f   : > { %531 = vmatpush1.bf16.msra.mxu0 %v1495_v31  ;;  %604 = vmatpush1.bf16.msra.mxu1 %v1496_v32 }
  0x72   : > { %549 = vmatmul.mubr.bf16.vlgmr.msra.gmra.mxu0 %v1497_v33  ;;  %622 = vmatmul.mubr.bf16.vlgmr.msra.gmra.mxu1 %v1497_v33 }
  0x73   : > { %558 = vmatprep.mubr.bf16.mxu0 %v1770_v0  ;;  %631 = vmatprep.mubr.bf16.mxu1 %v1770_v0 }
  0x7a   : > { %559 = vmatmul.mubr.bf16.gmra.mxu0 %v1498_v34  ;;  %632 = vmatmul.mubr.bf16.gmra.mxu1 %v1498_v34 }
  0x7b   : > { %568 = vmatprep.mubr.bf16.mxu0 %v1770_v0  ;;  %641 = vmatprep.mubr.bf16.mxu1 %v1770_v0 }
  0x82   : > { %569 = vmatmul.mubr.bf16.gmra.mxu0 %v1499_v35  ;;  %642 = vmatmul.mubr.bf16.gmra.mxu1 %v1499_v35 }
  0x83   : > { %578 = vmatprep.mubr.bf16.mxu0 %v1770_v0  ;;  %651 = vmatprep.mubr.bf16.mxu1 %v1770_v0 }
  0x8a   : > { %579 = vmatmul.mubr.bf16.gmra.mxu0 %v1500_v36  ;;  %652 = vmatmul.mubr.bf16.gmra.mxu1 %v1500_v36 }
 0x132   : > { %v550_v48 = vpop.f32.mrf.mxu0  ;;  %v623_v49 = vpop.f32.mrf.mxu1 }
 0x133   : > { %v1961_v52 = vadd.f32 %v550_v48, %v1954_v44  ;;  %v1964_v53 = vadd.f32 %v623_v49, %v1956_v45 }
 0x134   : > { %v552_v50 = vpop.f32.mrf.mxu0  ;;  %v625_v51 = vpop.f32.mrf.mxu1 }
 0x135   : > { %2390 = vst [vmem:[#allocation14_spill] sm:$0xff] %v1964_v53  ;;  %v1967_v54 = vadd.f32 %v552_v50, %v1958_v46  ;;  %v1974_v61 = vadd.f32 %v625_v51, %v1969_v55 }
 0x136   : > { %v554_v56 = vpop.f32.mrf.mxu0  ;;  %v627_v57 = vpop.f32.mrf.mxu1 }
 0x137   : > { %v670_v58 = vmax.f32 %v1961_v52, %v1967_v54  ;;  %v1977_v62 = vadd.f32 %v554_v56, %v1954_v44  ;;  %v1984_v3 = vadd.f32 %v627_v57, %v1956_v45 }
 0x138   : > { %v556_v59 = vpop.f32.mrf.mxu0  ;;  %v629_v60 = vpop.f32.mrf.mxu1 }
 0x139   : > { %v1980_v63 = vadd.f32 %v556_v59, %v1958_v46  ;;  %v671_v0 = vmax.f32 %v670_v58, %v1964_v53  ;;  %v1990_v6 = vadd.f32 %v629_v60, %v1969_v55 }
 0x13a   : > { %v560_v1 = vpop.f32.mrf.mxu0  ;;  %v633_v2 = vpop.f32.mrf.mxu1 }
 0x13b   : > { %v675_v4 = vmax.f32 %v1977_v62, %v1980_v63  ;;  %v672_v5 = vmax.f32 %v671_v0, %v1974_v61  ;;  %v1993_v9 = vadd.f32 %v560_v1, %v1954_v44  ;;  %v1996_v10 = vadd.f32 %v633_v2, %v1956_v45 }
 0x13c   : > { %v562_v7 = vpop.f32.mrf.mxu0  ;;  %v635_v8 = vpop.f32.mrf.mxu1 }
 0x13d   : > { %v1999_v11 = vadd.f32 %v562_v7, %v1958_v46  ;;  %673 = vmax.xlane.f32.xlu0 %v672_v5  ;;  %v676_v12 = vmax.f32 %v675_v4, %v1984_v3  ;;  %v2006_v19 = vadd.f32 %v635_v8, %v1969_v55 }
 0x13e   : > { %v564_v13 = vpop.f32.mrf.mxu0  ;;  %v637_v14 = vpop.f32.mrf.mxu1 }
 0x13f   : > { %v677_v15 = vmax.f32 %v676_v12, %v1990_v6  ;;  %v680_v16 = vmax.f32 %v1993_v9, %v1999_v11  ;;  %v2009_v20 = vadd.f32 %v564_v13, %v1954_v44  ;;  %v2016_v25 = vadd.f32 %v637_v14, %v1956_v45 }
 0x140   : > { %v566_v17 = vpop.f32.mrf.mxu0  ;;  %v639_v18 = vpop.f32.mrf.mxu1 }
 0x141   : > { %v2012_v21 = vadd.f32 %v566_v17, %v1958_v46  ;;  %678 = vmax.xlane.f32.xlu0 %v677_v15  ;;  %v681_v22 = vmax.f32 %v680_v16, %v1996_v10  ;;  %2391 = vst [vmem:[#allocation15_spill] sm:$0xff] %v2016_v25  ;;  %v2022_v28 = vadd.f32 %v639_v18, %v1969_v55 }
 0x142   : > { %v570_v23 = vpop.f32.mrf.mxu0  ;;  %v643_v24 = vpop.f32.mrf.mxu1 }
 0x143   : > { %v685_v26 = vmax.f32 %v2009_v20, %v2012_v21  ;;  %v682_v27 = vmax.f32 %v681_v22, %v2006_v19  ;;  %v2025_v31 = vadd.f32 %v570_v23, %v1954_v44  ;;  %v2028_v32 = vadd.f32 %v643_v24, %v1956_v45 }
 0x144   : > { %v572_v29 = vpop.f32.mrf.mxu0  ;;  %v645_v30 = vpop.f32.mrf.mxu1 }
 0x145   : > { %2392 = vst [vmem:[#allocation16_spill] sm:$0xff] %v2025_v31  ;;  %2393 = vst [vmem:[#allocation17_spill] sm:$0xff] %v2028_v32  ;;  %v2031_v33 = vadd.f32 %v572_v29, %v1958_v46  ;;  %683 = vmax.xlane.f32.xlu1 %v682_v27  ;;  %v686_v34 = vmax.f32 %v685_v26, %v2016_v25  ;;  %v2038_v41 = vadd.f32 %v645_v30, %v1969_v55  ;;  %v2103_v29 = vld [vmem:[#allocation2 + $0x8] sm:$0xff] }
 0x146   : > { %v574_v35 = vpop.f32.mrf.mxu0  ;;  %v647_v36 = vpop.f32.mrf.mxu1 }
 0x147   : > { %2394 = vst [vmem:[#allocation18_spill] sm:$0xff] %v2031_v33  ;;  %v690_v37 = vmax.f32 %v2025_v31, %v2031_v33  ;;  %v687_v38 = vmax.f32 %v686_v34, %v2022_v28  ;;  %2395 = vst [vmem:[#allocation19_spill] sm:$0xff] %v2038_v41  ;;  %v2041_v42 = vadd.f32 %v574_v35, %v1954_v44 }
 0x148   : > { %v576_v39 = vpop.f32.mrf.mxu0  ;;  %v649_v40 = vpop.f32.mrf.mxu1  ;;  %v2048_v50 = vadd.f32 %v647_v36, %v1956_v45  ;;  %v2113_v36 = vld [vmem:[#allocation2 + $0x10] sm:$0xff] }
 0x149   : > { %2396 = vst [vmem:[#allocation20_spill] sm:$0xff] %v2041_v42  ;;  %v2044_v43 = vadd.f32 %v576_v39, %v1958_v46  ;;  %688 = vmax.xlane.f32.xlu1 %v687_v38  ;;  %v691_v47 = vmax.f32 %v690_v37, %v2028_v32  ;;  %v2054_v57 = vadd.f32 %v649_v40, %v1969_v55  ;;  %v2123_v40 = vld [vmem:[#allocation2 + $0x18] sm:$0xff] }
 0x14a   : > { %v580_v48 = vpop.f32.mrf.mxu0  ;;  %v653_v49 = vpop.f32.mrf.mxu1  ;;  %2397 = vst [vmem:[#allocation21_spill] sm:$0xff] %v2048_v50 }
 0x14b   : > { %v695_v51 = vmax.f32 %v2041_v42, %v2044_v43  ;;  %v692_v56 = vmax.f32 %v691_v47, %v2038_v41  ;;  %v2057_v60 = vadd.f32 %v580_v48, %v1954_v44  ;;  %v2060_v0 = vadd.f32 %v653_v49, %v1956_v45 }
 0x14c   : > { %v582_v58 = vpop.f32.mrf.mxu0  ;;  %v655_v59 = vpop.f32.mrf.mxu1 }
 0x14d   : > { %2398 = vst [vmem:[#allocation22_spill] sm:$0xff] %v2060_v0  ;;  %v2063_v1 = vadd.f32 %v582_v58, %v1958_v46  ;;  %693 = vmax.xlane.f32.xlu0 %v692_v56  ;;  %v696_v2 = vmax.f32 %v695_v51, %v2048_v50  ;;  %v2070_v13 = vadd.f32 %v655_v59, %v1969_v55  ;;  %v2133_v51 = vld [vmem:[#allocation2 + $0x20] sm:$0xff] }
 0x14e   : > { %v584_v4 = vpop.f32.mrf.mxu0  ;;  %v657_v5 = vpop.f32.mrf.mxu1 }
 0x14f   : > { %v700_v7 = vmax.f32 %v2057_v60, %v2063_v1  ;;  %v697_v8 = vmax.f32 %v696_v2, %v2054_v57  ;;  %v2073_v14 = vadd.f32 %v584_v4, %v1954_v44  ;;  %v2080_v18 = vadd.f32 %v657_v5, %v1956_v45  ;;  %v2143_v2 = vld [vmem:[#allocation2 + $0x28] sm:$0xff] }
 0x150   : > { %v586_v12 = vpop.f32.mrf.mxu0  ;;  %v659_v17 = vpop.f32.mrf.mxu1 }
 0x151   : > { %v2076_v15 = vadd.f32 %v586_v12, %v1958_v46  ;;  %698 = vmax.xlane.f32.xlu1 %v697_v8  ;;  %v701_v16 = vmax.f32 %v700_v7, %v2060_v0  ;;  %v2086_v24 = vadd.f32 %v659_v17, %v1969_v55  ;;  %v1772_v46 = vmov 0.0   ;;  %v2098_v55 = vld [vmem:[#allocation2] sm:$0xff]  ;;  %v2153_v8 = vld [vmem:[#allocation2 + $0x30] sm:$0xff] }
 0x152   : > { %262 = vst.msk [vmem:[#allocation3] sm:$0xff] %vm253_vm0, %v1772_v46  ;;  %263 = vst.msk [vmem:[#allocation3 + $0x8] sm:$0xff] %vm253_vm0, %v1772_v46 }
 0x153   : > { %v705_v22 = vmax.f32 %v2073_v14, %v2076_v15  ;;  %v702_v23 = vmax.f32 %v701_v16, %v2070_v13  ;;  %264 = vst.msk [vmem:[#allocation3 + $0x10] sm:$0xff] %vm253_vm0, %v1772_v46  ;;  %265 = vst.msk [vmem:[#allocation3 + $0x18] sm:$0xff] %vm253_vm0, %v1772_v46 }
 0x154   : > { %266 = vst.msk [vmem:[#allocation3 + $0x20] sm:$0xff] %vm253_vm0, %v1772_v46  ;;  %267 = vst.msk [vmem:[#allocation3 + $0x28] sm:$0xff] %vm253_vm0, %v1772_v46 }
 0x155   : > { %703 = vmax.xlane.f32.xlu0 %v702_v23  ;;  %v706_v44 = vmax.f32 %v705_v22, %v2080_v18  ;;  %268 = vst.msk [vmem:[#allocation3 + $0x30] sm:$0xff] %vm253_vm0, %v1772_v46  ;;  %269 = vst.msk [vmem:[#allocation3 + $0x38] sm:$0xff] %vm253_vm0, %v1772_v46  ;;  %v2163_v22 = vld [vmem:[#allocation2 + $0x38] sm:$0xff] }
 0x157   : > { %v707_v45 = vmax.f32 %v706_v44, %v2086_v24 }
 0x159   : > { %708 = vmax.xlane.f32.xlu1 %v707_v45 }
 0x1c6   : > { %v674_v26 = vpop.xlane.xlu0 %673 }
 0x1c7   : > { %v2101_v27 = vmax.f32 %v2098_v55, %v674_v26 }
 0x1c9   : > { %951 = vst.msk [vmem:[#allocation2] sm:$0xff] %vm253_vm0, %v2101_v27  ;;  %760 = vperm.xlu0 %1447, %v2101_v27  }
 0x1ca   : > { %v679_v34 = vpop.xlane.xlu0 %678 }
 0x1cb   : > { %v2111_v35 = vmax.f32 %v2103_v29, %v679_v34 }
 0x1cd   : > { %952 = vst.msk [vmem:[#allocation2 + $0x8] sm:$0xff] %vm253_vm0, %v2111_v35  ;;  %765 = vperm.xlu1 %1448, %v2111_v35  }
 0x1ce   : > { %v684_v38 = vpop.xlane.xlu1 %683 }
 0x1cf   : > { %v2121_v39 = vmax.f32 %v2113_v36, %v684_v38 }
 0x1d1   : > { %953 = vst.msk [vmem:[#allocation2 + $0x10] sm:$0xff] %vm253_vm0, %v2121_v39  ;;  %770 = vperm.xlu1 %1448, %v2121_v39  }
 0x1d2   : > { %v689_v48 = vpop.xlane.xlu1 %688 }
 0x1d3   : > { %v2131_v49 = vmax.f32 %v2123_v40, %v689_v48 }
 0x1d5   : > { %954 = vst.msk [vmem:[#allocation2 + $0x18] sm:$0xff] %vm253_vm0, %v2131_v49  ;;  %775 = vperm.xlu1 %1448, %v2131_v49  }
 0x1d6   : > { %v694_v58 = vpop.xlane.xlu0 %693 }
 0x1d7   : > { %v2141_v59 = vmax.f32 %v2133_v51, %v694_v58 }
 0x1d9   : > { %955 = vst.msk [vmem:[#allocation2 + $0x20] sm:$0xff] %vm253_vm0, %v2141_v59  ;;  %780 = vperm.xlu1 %1448, %v2141_v59  }
 0x1da   : > { %v699_v5 = vpop.xlane.xlu1 %698 }
 0x1db   : > { %v2151_v7 = vmax.f32 %v2143_v2, %v699_v5 }
 0x1dd   : > { %956 = vst.msk [vmem:[#allocation2 + $0x28] sm:$0xff] %vm253_vm0, %v2151_v7  ;;  %785 = vperm.xlu1 %1448, %v2151_v7  }
 0x1de   : > { %v704_v16 = vpop.xlane.xlu0 %703 }
 0x1df   : > { %v2161_v17 = vmax.f32 %v2153_v8, %v704_v16 }
 0x1e1   : > { %957 = vst.msk [vmem:[#allocation2 + $0x30] sm:$0xff] %vm253_vm0, %v2161_v17  ;;  %790 = vperm.xlu1 %1448, %v2161_v17  }
 0x1e2   : > { %v709_v44 = vpop.xlane.xlu1 %708 }
 0x1e3   : > { %v2171_v46 = vmax.f32 %v2163_v22, %v709_v44 }
 0x1e5   : > { %958 = vst.msk [vmem:[#allocation2 + $0x38] sm:$0xff] %vm253_vm0, %v2171_v46  ;;  %795 = vperm.xlu1 %1448, %v2171_v46  }
 0x244   : > { %v761_v26 = vpop.permute.xlu0 %760 }
 0x245   : > { %v798_v34 = vsub.f32 %v1961_v52, %v761_v26  ;;  %v799_v38 = vsub.f32 %v1967_v54, %v761_v26  ;;  %v800_v48 = vsub.f32 %v1964_v53, %v761_v26  ;;  %v801_v58 = vsub.f32 %v1974_v61, %v761_v26 }
 0x247   : > { %v830_v5 = vmul.f32 1.442695, %v798_v34  ;;  %v832_v16 = vmul.f32 1.442695, %v799_v38  ;;  %v834_v44 = vmul.f32 1.442695, %v800_v48 }
 0x248   : > { %v836_v23 = vmul.f32 1.442695, %v801_v58  ;;  %v766_v12 = vpop.permute.xlu1 %765 }
 0x249   : > { %1501 = vpow2.f32 %v830_v5  ;;  %v802_v45 = vsub.f32 %v1977_v62, %v766_v12  ;;  %v803_v4 = vsub.f32 %v1980_v63, %v766_v12  ;;  %v804_v56 = vsub.f32 %v1984_v3, %v766_v12 }
 0x24a   : > { %1503 = vpow2.f32 %v832_v16  ;;  %v805_v47 = vsub.f32 %v1990_v6, %v766_v12 }
 0x24b   : > { %1505 = vpow2.f32 %v834_v44  ;;  %v838_v37 = vmul.f32 1.442695, %v802_v45  ;;  %v840_v30 = vmul.f32 1.442695, %v803_v4  ;;  %v842_v53 = vmul.f32 1.442695, %v804_v56 }
 0x24c   : > { %1507 = vpow2.f32 %v836_v23  ;;  %v844_v26 = vmul.f32 1.442695, %v805_v47  ;;  %v771_v34 = vpop.permute.xlu1 %770 }
 0x24d   : > { %1509 = vpow2.f32 %v838_v37  ;;  %v806_v38 = vsub.f32 %v1993_v9, %v771_v34  ;;  %v807_v48 = vsub.f32 %v1999_v11, %v771_v34  ;;  %v808_v58 = vsub.f32 %v1996_v10, %v771_v34 }
 0x24e   : > { %1511 = vpow2.f32 %v840_v30  ;;  %v809_v5 = vsub.f32 %v2006_v19, %v771_v34 }
 0x24f   : > { %1513 = vpow2.f32 %v842_v53  ;;  %v846_v16 = vmul.f32 1.442695, %v806_v38  ;;  %v848_v12 = vmul.f32 1.442695, %v807_v48  ;;  %v850_v44 = vmul.f32 1.442695, %v808_v58 }
 0x250   : > { %1515 = vpow2.f32 %v844_v26  ;;  %v852_v4 = vmul.f32 1.442695, %v809_v5  ;;  %v776_v56 = vpop.permute.xlu1 %775 }
 0x251   : > { %1517 = vpow2.f32 %v846_v16  ;;  %v810_v47 = vsub.f32 %v2009_v20, %v776_v56  ;;  %v811_v37 = vsub.f32 %v2012_v21, %v776_v56  ;;  %v812_v23 = vsub.f32 %v2016_v25, %v776_v56 }
 0x252   : > { %1519 = vpow2.f32 %v848_v12  ;;  %v813_v45 = vsub.f32 %v2022_v28, %v776_v56 }
 0x253   : > { %1521 = vpow2.f32 %v850_v44  ;;  %v854_v30 = vmul.f32 1.442695, %v810_v47  ;;  %v856_v34 = vmul.f32 1.442695, %v811_v37  ;;  %v858_v53 = vmul.f32 1.442695, %v812_v23 }
 0x254   : > { %1523 = vpow2.f32 %v852_v4  ;;  %v860_v38 = vmul.f32 1.442695, %v813_v45  ;;  %v781_v48 = vpop.permute.xlu1 %780 }
 0x255   : > { %1525 = vpow2.f32 %v854_v30  ;;  %v814_v26 = vsub.f32 %v2025_v31, %v781_v48  ;;  %v815_v58 = vsub.f32 %v2031_v33, %v781_v48  ;;  %v816_v5 = vsub.f32 %v2028_v32, %v781_v48 }
 0x256   : > { %v1502_v16 = vpop.eup %1501  ;;  %1527 = vpow2.f32 %v856_v34  ;;  %v817_v12 = vsub.f32 %v2038_v41, %v781_v48 }
 0x257   : > { %v1504_v25 = vpop.eup %1503  ;;  %1529 = vpow2.f32 %v858_v53  ;;  %v862_v44 = vmul.f32 1.442695, %v814_v26  ;;  %v864_v56 = vmul.f32 1.442695, %v815_v58  ;;  %v866_v47 = vmul.f32 1.442695, %v816_v5 }
 0x258   : > { %v1506_v37 = vpop.eup %1505  ;;  %1531 = vpow2.f32 %v860_v38  ;;  %v868_v4 = vmul.f32 1.442695, %v817_v12  ;;  %v786_v23 = vpop.permute.xlu1 %785  ;;  %v894_v45 = vadd.f32 %v1504_v25, %v1502_v16 }
 0x259   : > { %v1508_v30 = vpop.eup %1507  ;;  %1533 = vpow2.f32 %v862_v44  ;;  %v818_v33 = vsub.f32 %v2041_v42, %v786_v23  ;;  %v819_v32 = vsub.f32 %v2044_v43, %v786_v23  ;;  %v820_v34 = vsub.f32 %v2048_v50, %v786_v23 }
 0x25a   : > { %v1510_v31 = vpop.eup %1509  ;;  %1535 = vpow2.f32 %v864_v56  ;;  %v821_v53 = vsub.f32 %v2054_v57, %v786_v23  ;;  %v895_v48 = vadd.f32 %v1506_v37, %v894_v45 }
 0x25b   : > { %v1512_v26 = vpop.eup %1511  ;;  %1537 = vpow2.f32 %v866_v47  ;;  %v870_v58 = vmul.f32 1.442695, %v818_v33  ;;  %v872_v38 = vmul.f32 1.442695, %v819_v32  ;;  %v874_v5 = vmul.f32 1.442695, %v820_v34 }
 0x25c   : > { %v1514_v12 = vpop.eup %1513  ;;  %1539 = vpow2.f32 %v868_v4  ;;  %v876_v25 = vmul.f32 1.442695, %v821_v53  ;;  %v791_v16 = vpop.permute.xlu1 %790  ;;  %v896_v44 = vadd.f32 %v1508_v30, %v895_v48  ;;  %v899_v42 = vadd.f32 %v1512_v26, %v1510_v31 }
 0x25d   : > { %v1516_v41 = vpop.eup %1515  ;;  %1541 = vpow2.f32 %v870_v58  ;;  %v822_v50 = vsub.f32 %v2057_v60, %v791_v16  ;;  %v823_v56 = vsub.f32 %v2063_v1, %v791_v16  ;;  %v824_v23 = vsub.f32 %v2060_v0, %v791_v16 }
 0x25e   : > { %v1518_v37 = vpop.eup %1517  ;;  %1543 = vpow2.f32 %v872_v38  ;;  %v825_v33 = vsub.f32 %v2070_v13, %v791_v16  ;;  %897 = vadd.xlane.f32.xlu1 %v896_v44  ;;  %v900_v32 = vadd.f32 %v1514_v12, %v899_v42 }
 0x25f   : > { %v1520_v47 = vpop.eup %1519  ;;  %1545 = vpow2.f32 %v874_v5  ;;  %v878_v4 = vmul.f32 1.442695, %v822_v50  ;;  %v880_v45 = vmul.f32 1.442695, %v823_v56  ;;  %v882_v30 = vmul.f32 1.442695, %v824_v23 }
 0x260   : > { %v1522_v31 = vpop.eup %1521  ;;  %1547 = vpow2.f32 %v876_v25  ;;  %v884_v34 = vmul.f32 1.442695, %v825_v33  ;;  %v796_v53 = vpop.permute.xlu1 %795  ;;  %v901_v48 = vadd.f32 %v1516_v41, %v900_v32  ;;  %v904_v26 = vadd.f32 %v1520_v47, %v1518_v37 }
 0x261   : > { %v1524_v58 = vpop.eup %1523  ;;  %1549 = vpow2.f32 %v878_v4  ;;  %v826_v0 = vsub.f32 %v2073_v14, %v796_v53  ;;  %v827_v38 = vsub.f32 %v2076_v15, %v796_v53  ;;  %v828_v16 = vsub.f32 %v2080_v18, %v796_v53 }
 0x262   : > { %v1526_v42 = vpop.eup %1525  ;;  %1551 = vpow2.f32 %v880_v45  ;;  %v829_v50 = vsub.f32 %v2086_v24, %v796_v53  ;;  %902 = vadd.xlane.f32.xlu0 %v901_v48  ;;  %v905_v5 = vadd.f32 %v1522_v31, %v904_v26 }
 0x263   : > { %v1528_v12 = vpop.eup %1527  ;;  %1553 = vpow2.f32 %v882_v30  ;;  %v886_v25 = vmul.f32 1.442695, %v826_v0  ;;  %v888_v44 = vmul.f32 1.442695, %v827_v38  ;;  %v890_v56 = vmul.f32 1.442695, %v828_v16 }
 0x264   : > { %v1530_v41 = vpop.eup %1529  ;;  %1555 = vpow2.f32 %v884_v34  ;;  %v906_v23 = vadd.f32 %v1524_v58, %v905_v5  ;;  %v909_v37 = vadd.f32 %v1528_v12, %v1526_v42  ;;  %v892_v47 = vmul.f32 1.442695, %v829_v50 }
 0x265   : > { %v1532_v33 = vpop.eup %1531  ;;  %1557 = vpow2.f32 %v886_v25 }
 0x266   : > { %v1534_v32 = vpop.eup %1533  ;;  %1559 = vpow2.f32 %v888_v44  ;;  %907 = vadd.xlane.f32.xlu0 %v906_v23  ;;  %v910_v4 = vadd.f32 %v1530_v41, %v909_v37 }
 0x267   : > { %v1536_v45 = vpop.eup %1535  ;;  %1561 = vpow2.f32 %v890_v56 }
 0x268   : > { %v1538_v53 = vpop.eup %1537  ;;  %v911_v31 = vadd.f32 %v1532_v33, %v910_v4  ;;  %v914_v48 = vadd.f32 %v1536_v45, %v1534_v32  ;;  %1563 = vpow2.f32 %v892_v47 }
 0x269   : > { %v1540_v30 = vpop.eup %1539 }
 0x26a   : > { %v1542_v0 = vpop.eup %1541  ;;  %912 = vadd.xlane.f32.xlu1 %v911_v31  ;;  %v915_v34 = vadd.f32 %v1538_v53, %v914_v48  ;;  %v2399_v48 = vsub.f32 %v2098_v55, %v2101_v27  ;;  %v2403_v55 = vsub.f32 %v2133_v51, %v2141_v59 }
 0x26b   : > { %v1544_v26 = vpop.eup %1543 }
 0x26c   : > { %v1546_v58 = vpop.eup %1545  ;;  %v916_v38 = vadd.f32 %v1540_v30, %v915_v34  ;;  %v919_v16 = vadd.f32 %v1544_v26, %v1542_v0  ;;  %v734_v30 = vmul.f32 1.442695, %v2399_v48  ;;  %v2400_v0 = vsub.f32 %v2103_v29, %v2111_v35 }
 0x26d   : > { %v1548_v42 = vpop.eup %1547  ;;  %v2401_v26 = vsub.f32 %v2113_v36, %v2121_v39  ;;  %v742_v27 = vmul.f32 1.442695, %v2403_v55  ;;  %v2404_v29 = vsub.f32 %v2143_v2, %v2151_v7  ;;  %v2406_v2 = vsub.f32 %v2163_v22, %v2171_v46  ;;  %v724_v55 = vld [vmem:[#allocation3 + $0x30] sm:$0xff] }
 0x26e   : > { %v1550_v5 = vpop.eup %1549  ;;  %917 = vadd.xlane.f32.xlu0 %v916_v38  ;;  %v920_v50 = vadd.f32 %v1546_v58, %v919_v16  ;;  %1565 = vpow2.f32 %v734_v30  ;;  %v736_v34 = vmul.f32 1.442695, %v2400_v0  ;;  %v2402_v38 = vsub.f32 %v2123_v40, %v2131_v49  ;;  %v723_v0 = vld [vmem:[#allocation3 + $0x28] sm:$0xff] }
 0x26f   : > { %v1552_v12 = vpop.eup %1551  ;;  %v738_v58 = vmul.f32 1.442695, %v2401_v26  ;;  %v744_v35 = vmul.f32 1.442695, %v2404_v29  ;;  %v2405_v40 = vsub.f32 %v2153_v8, %v2161_v17  ;;  %v748_v7 = vmul.f32 1.442695, %v2406_v2 }
 0x270   : > { %v1554_v25 = vpop.eup %1553  ;;  %v921_v44 = vadd.f32 %v1548_v42, %v920_v50  ;;  %v924_v41 = vadd.f32 %v1552_v12, %v1550_v5  ;;  %1567 = vpow2.f32 %v736_v34  ;;  %v740_v16 = vmul.f32 1.442695, %v2402_v38  ;;  %v718_v5 = vld [vmem:[#allocation3] sm:$0xff]  ;;  %v719_v12 = vld [vmem:[#allocation3 + $0x8] sm:$0xff] }
 0x271   : > { %v1556_v56 = vpop.eup %1555  ;;  %1569 = vpow2.f32 %v738_v58  ;;  %v746_v49 = vmul.f32 1.442695, %v2405_v40  ;;  %v1000_v2 = vld [vmem:[#allocation2 + $0x8] sm:$0xff] }
 0x272   : > { %v1558_v23 = vpop.eup %1557  ;;  %922 = vadd.xlane.f32.xlu1 %v921_v44  ;;  %v925_v37 = vadd.f32 %v1554_v25, %v924_v41  ;;  %1571 = vpow2.f32 %v740_v16  ;;  %v720_v41 = vld [vmem:[#allocation3 + $0x10] sm:$0xff] }
 0x273   : > { %v1560_v33 = vpop.eup %1559  ;;  %1573 = vpow2.f32 %v742_v27 }
 0x274   : > { %v926_v32 = vadd.f32 %v1556_v56, %v925_v37  ;;  %v929_v47 = vadd.f32 %v1560_v33, %v1558_v23  ;;  %v1562_v4 = vpop.eup %1561  ;;  %1575 = vpow2.f32 %v744_v35 }
 0x275   : > { %v1564_v53 = vpop.eup %1563  ;;  %1577 = vpow2.f32 %v746_v49 }
 0x276   : > { %927 = vadd.xlane.f32.xlu0 %v926_v32  ;;  %v930_v45 = vadd.f32 %v1562_v4, %v929_v47  ;;  %v721_v32 = vld [vmem:[#allocation3 + $0x18] sm:$0xff]  ;;  %1579 = vpow2.f32 %v748_v7 }
 0x278   : > { %v931_v31 = vadd.f32 %v1564_v53, %v930_v45  ;;  %v722_v53 = vld [vmem:[#allocation3 + $0x20] sm:$0xff] }
 0x27a   : > { %932 = vadd.xlane.f32.xlu1 %v931_v31 }
 0x27b   : > { %v1566_v42 = vpop.eup %1565 }
 0x27c   : > { %v750_v50 = vmul.f32 %v1566_v42, %v718_v5 }
 0x27d   : > { %v1568_v36 = vpop.eup %1567 }
 0x27e   : > { %v751_v51 = vmul.f32 %v1568_v36, %v719_v12  ;;  %v1570_v59 = vpop.eup %1569  ;;  %v725_v36 = vld [vmem:[#allocation3 + $0x38] sm:$0xff] }
 0x27f   : > { %v752_v23 = vmul.f32 %v1570_v59, %v720_v41  ;;  %v1572_v37 = vpop.eup %1571 }
 0x280   : > { %v753_v47 = vmul.f32 %v1572_v37, %v721_v32  ;;  %v1574_v4 = vpop.eup %1573  ;;  %v1001_v32 = vld [vmem:[#allocation2 + $0x10] sm:$0xff] }
 0x281   : > { %v754_v46 = vmul.f32 %v1574_v4, %v722_v53  ;;  %v1576_v48 = vpop.eup %1575 }
 0x282   : > { %v755_v58 = vmul.f32 %v1576_v48, %v723_v0  ;;  %v1578_v38 = vpop.eup %1577  ;;  %v1003_v48 = vld [vmem:[#allocation2 + $0x20] sm:$0xff] }
 0x283   : > { %v1580_v5 = vpop.eup %1579  ;;  %v756_v29 = vmul.f32 %v1578_v38, %v724_v55  ;;  %v1005_v55 = vld [vmem:[#allocation2 + $0x30] sm:$0xff] }
 0x284   : > { %v757_v49 = vmul.f32 %v1580_v5, %v725_v36 }
 0x2e7   : > { %v898_v39 = vpop.xlane.xlu1 %897 }
 0x2e8   : > { %v934_v25 = vadd.f32 %v898_v39, %v750_v50 }
 0x2ea   : > { %943 = vst.msk [vmem:[#allocation3] sm:$0xff] %vm253_vm0, %v934_v25  ;;  %v999_v25 = vld [vmem:[#allocation2] sm:$0xff] }
 0x2eb   : > { %v903_v44 = vpop.xlane.xlu0 %902 }
 0x2ec   : > { %v935_v56 = vadd.f32 %v903_v44, %v751_v51 }
 0x2ee   : > { %944 = vst.msk [vmem:[#allocation3 + $0x8] sm:$0xff] %vm253_vm0, %v935_v56 }
 0x2ef   : > { %v908_v33 = vpop.xlane.xlu0 %907 }
 0x2f0   : > { %v936_v8 = vadd.f32 %v908_v33, %v752_v23 }
 0x2f1   : > { %v1007_v17 = vld [vmem:[#allocation3] sm:$0xff] }
 0x2f2   : > { %945 = vst.msk [vmem:[#allocation3 + $0x10] sm:$0xff] %vm253_vm0, %v936_v8  ;;  %1581 = vlog2.f32 %v1007_v17 }
 0x2f3   : > { %v913_v45 = vpop.xlane.xlu1 %912 }
 0x2f4   : > { %v937_v31 = vadd.f32 %v913_v45, %v753_v47  ;;  %v1002_v45 = vld [vmem:[#allocation2 + $0x18] sm:$0xff] }
 0x2f5   : > { %v1008_v22 = vld [vmem:[#allocation3 + $0x8] sm:$0xff] }
 0x2f6   : > { %946 = vst.msk [vmem:[#allocation3 + $0x18] sm:$0xff] %vm253_vm0, %v937_v31  ;;  %1583 = vlog2.f32 %v1008_v22 }
 0x2f7   : > { %v918_v30 = vpop.xlane.xlu0 %917 }
 0x2f8   : > { %v938_v34 = vadd.f32 %v918_v30, %v754_v46 }
 0x2f9   : > { %v1009_v26 = vld [vmem:[#allocation3 + $0x10] sm:$0xff] }
 0x2fa   : > { %947 = vst.msk [vmem:[#allocation3 + $0x20] sm:$0xff] %vm253_vm0, %v938_v34  ;;  %1585 = vlog2.f32 %v1009_v26  ;;  %v1004_v26 = vld [vmem:[#allocation2 + $0x28] sm:$0xff] }
 0x2fb   : > { %v923_v16 = vpop.xlane.xlu1 %922 }
 0x2fc   : > { %v939_v27 = vadd.f32 %v923_v16, %v755_v58 }
 0x2fd   : > { %v1010_v42 = vld [vmem:[#allocation3 + $0x18] sm:$0xff] }
 0x2fe   : > { %948 = vst.msk [vmem:[#allocation3 + $0x28] sm:$0xff] %vm253_vm0, %v939_v27  ;;  %1587 = vlog2.f32 %v1010_v42 }
 0x2ff   : > { %v1582_v35 = vpop.eup %1581  ;;  %v928_v50 = vpop.xlane.xlu0 %927 }
 0x300   : > { %v940_v39 = vadd.f32 %v928_v50, %v756_v29  ;;  %v1016_v12 = vmul.f32 0.6931472, %v1582_v35  ;;  %v1006_v29 = vld [vmem:[#allocation2 + $0x38] sm:$0xff] }
 0x301   : > { %v1011_v40 = vld [vmem:[#allocation3 + $0x20] sm:$0xff] }
 0x302   : > { %949 = vst.msk [vmem:[#allocation3 + $0x30] sm:$0xff] %vm253_vm0, %v940_v39  ;;  %v1031_v51 = vadd.f32 %v1016_v12, %v999_v25  ;;  %1589 = vlog2.f32 %v1011_v40  ;;  %v2407_v12 = vld [vmem:[#allocation14_spill] sm:$0xff] }
 0x303   : > { %v1584_v59 = vpop.eup %1583  ;;  %v933_v44 = vpop.xlane.xlu1 %932 }
 0x304   : > { %v941_v41 = vadd.f32 %v933_v44, %v757_v49  ;;  %1073 = vperm.xlu0 %1447, %v1031_v51   ;;  %v1018_v56 = vmul.f32 0.6931472, %v1584_v59 }
 0x305   : > { %v1012_v7 = vld [vmem:[#allocation3 + $0x28] sm:$0xff] }
 0x306   : > { %950 = vst.msk [vmem:[#allocation3 + $0x38] sm:$0xff] %vm253_vm0, %v941_v41  ;;  %v1032_v23 = vadd.f32 %v1018_v56, %v1000_v2  ;;  %1591 = vlog2.f32 %v1012_v7  ;;  %v2408_v56 = vld [vmem:[#allocation15_spill] sm:$0xff] }
 0x307   : > { %v1586_v37 = vpop.eup %1585 }
 0x308   : > { %1078 = vperm.xlu1 %1448, %v1032_v23   ;;  %v1020_v33 = vmul.f32 0.6931472, %v1586_v37  ;;  %v2410_v23 = vld [vmem:[#allocation18_spill] sm:$0xff]  ;;  %v2411_v37 = vld [vmem:[#allocation17_spill] sm:$0xff] }
 0x309   : > { %v1013_v8 = vld [vmem:[#allocation3 + $0x30] sm:$0xff] }
 0x30a   : > { %v1033_v17 = vadd.f32 %v1020_v33, %v1001_v32  ;;  %1593 = vlog2.f32 %v1013_v8  ;;  %v2413_v8 = vld [vmem:[#allocation20_spill] sm:$0xff] }
 0x30b   : > { %v1588_v47 = vpop.eup %1587 }
 0x30c   : > { %1083 = vperm.xlu1 %1448, %v1033_v17   ;;  %v1022_v4 = vmul.f32 0.6931472, %v1588_v47 }
 0x30d   : > { %v1014_v53 = vld [vmem:[#allocation3 + $0x38] sm:$0xff] }
 0x30e   : > { %v1034_v31 = vadd.f32 %v1022_v4, %v1002_v45  ;;  %1595 = vlog2.f32 %v1014_v53  ;;  %v2414_v4 = vld [vmem:[#allocation21_spill] sm:$0xff] }
 0x30f   : > { %v1590_v22 = vpop.eup %1589 }
 0x310   : > { %1088 = vperm.xlu0 %1447, %v1034_v31   ;;  %v1024_v46 = vmul.f32 0.6931472, %v1590_v22 }
 0x312   : > { %v1035_v30 = vadd.f32 %v1024_v46, %v1003_v48  ;;  %v2415_v48 = vld [vmem:[#allocation22_spill] sm:$0xff] }
 0x313   : > { %v1592_v0 = vpop.eup %1591 }
 0x314   : > { %1093 = vperm.xlu1 %1448, %v1035_v30   ;;  %v1026_v34 = vmul.f32 0.6931472, %v1592_v0 }
 0x316   : > { %v1036_v58 = vadd.f32 %v1026_v34, %v1004_v26 }
 0x317   : > { %v1594_v38 = vpop.eup %1593 }
 0x318   : > { %1098 = vperm.xlu0 %1447, %v1036_v58   ;;  %v1028_v16 = vmul.f32 0.6931472, %v1594_v38 }
 0x31a   : > { %v1037_v27 = vadd.f32 %v1028_v16, %v1005_v55 }
 0x31b   : > { %v1596_v42 = vpop.eup %1595 }
 0x31c   : > { %1103 = vperm.xlu1 %1448, %v1037_v27   ;;  %v1030_v5 = vmul.f32 0.6931472, %v1596_v42 }
 0x31e   : > { %v1038_v35 = vadd.f32 %v1030_v5, %v1006_v29 }
 0x320   : > { %1108 = vperm.xlu0 %1447, %v1038_v35  }
 0x37f   : > { %v1074_v50 = vpop.permute.xlu0 %1073 }
 0x380   : > { %v1111_v36 = vsub.f32 %v1961_v52, %v1074_v50  ;;  %v1112_v39 = vsub.f32 %v1967_v54, %v1074_v50  ;;  %v1113_v25 = vsub.f32 %v2407_v12, %v1074_v50  ;;  %v1114_v40 = vsub.f32 %v1974_v61, %v1074_v50 }
 0x382   : > { %1143 = vst [vmem:[%s2247_s22] sm:$0xff] %v1111_v36  ;;  %1144 = vst [vmem:[%s2247_s22 + $0x8] sm:$0xff] %v1112_v39 }
 0x383   : > { %1145 = vst [vmem:[%s2247_s22 + $0x10] sm:$0xff] %v1113_v25  ;;  %1146 = vst [vmem:[%s2247_s22 + $0x18] sm:$0xff] %v1114_v40  ;;  %v1079_v52 = vpop.permute.xlu1 %1078 }
 0x384   : > { %v1115_v54 = vsub.f32 %v1977_v62, %v1079_v52  ;;  %v1116_v61 = vsub.f32 %v1980_v63, %v1079_v52  ;;  %v1117_v49 = vsub.f32 %v1984_v3, %v1079_v52  ;;  %v1118_v51 = vsub.f32 %v1990_v6, %v1079_v52 }
 0x386   : > { %1147 = vst [vmem:[%s2247_s22 + $0x20] sm:$0xff] %v1115_v54  ;;  %1148 = vst [vmem:[%s2247_s22 + $0x28] sm:$0xff] %v1116_v61 }
 0x387   : > { %1149 = vst [vmem:[%s2247_s22 + $0x30] sm:$0xff] %v1117_v49  ;;  %1150 = vst [vmem:[%s2247_s22 + $0x38] sm:$0xff] %v1118_v51  ;;  %v1084_v59 = vpop.permute.xlu1 %1083 }
 0x388   : > { %v1119_v44 = vsub.f32 %v1993_v9, %v1084_v59  ;;  %v1120_v62 = vsub.f32 %v1999_v11, %v1084_v59  ;;  %v1121_v41 = vsub.f32 %v1996_v10, %v1084_v59  ;;  %v1122_v63 = vsub.f32 %v2006_v19, %v1084_v59  ;;  %v2409_v19 = vld [vmem:[#allocation16_spill] sm:$0xff] }
 0x38a   : > { %1151 = vst [vmem:[%s2247_s22 + $0x40] sm:$0xff] %v1119_v44  ;;  %1152 = vst [vmem:[%s2247_s22 + $0x48] sm:$0xff] %v1120_v62 }
 0x38b   : > { %1153 = vst [vmem:[%s2247_s22 + $0x50] sm:$0xff] %v1121_v41  ;;  %1154 = vst [vmem:[%s2247_s22 + $0x58] sm:$0xff] %v1122_v63  ;;  %v1089_v3 = vpop.permute.xlu0 %1088 }
 0x38c   : > { %v1123_v6 = vsub.f32 %v2009_v20, %v1089_v3  ;;  %v1124_v9 = vsub.f32 %v2012_v21, %v1089_v3  ;;  %v1125_v2 = vsub.f32 %v2408_v56, %v1089_v3  ;;  %v1126_v11 = vsub.f32 %v2022_v28, %v1089_v3  ;;  %v2412_v21 = vld [vmem:[#allocation19_spill] sm:$0xff] }
 0x38e   : > { %1155 = vst [vmem:[%s2247_s22 + $0x60] sm:$0xff] %v1123_v6  ;;  %1156 = vst [vmem:[%s2247_s22 + $0x68] sm:$0xff] %v1124_v9 }
 0x38f   : > { %1157 = vst [vmem:[%s2247_s22 + $0x70] sm:$0xff] %v1125_v2  ;;  %1158 = vst [vmem:[%s2247_s22 + $0x78] sm:$0xff] %v1126_v11  ;;  %v1094_v10 = vpop.permute.xlu1 %1093 }
 0x390   : > { %v1127_v7 = vsub.f32 %v2409_v19, %v1094_v10  ;;  %v1128_v20 = vsub.f32 %v2410_v23, %v1094_v10  ;;  %v1129_v33 = vsub.f32 %v2411_v37, %v1094_v10  ;;  %v1130_v32 = vsub.f32 %v2412_v21, %v1094_v10 }
 0x392   : > { %1159 = vst [vmem:[%s2247_s22 + $0x80] sm:$0xff] %v1127_v7  ;;  %1160 = vst [vmem:[%s2247_s22 + $0x88] sm:$0xff] %v1128_v20 }
 0x393   : > { %1161 = vst [vmem:[%s2247_s22 + $0x90] sm:$0xff] %v1129_v33  ;;  %1162 = vst [vmem:[%s2247_s22 + $0x98] sm:$0xff] %v1130_v32  ;;  %v1099_v28 = vpop.permute.xlu0 %1098 }
 0x394   : > { %v1131_v17 = vsub.f32 %v2413_v8, %v1099_v28  ;;  %v1132_v47 = vsub.f32 %v2044_v43, %v1099_v28  ;;  %v1133_v45 = vsub.f32 %v2414_v4, %v1099_v28  ;;  %v1134_v53 = vsub.f32 %v2054_v57, %v1099_v28 }
 0x396   : > { %1163 = vst [vmem:[%s2247_s22 + $0xa0] sm:$0xff] %v1131_v17  ;;  %1164 = vst [vmem:[%s2247_s22 + $0xa8] sm:$0xff] %v1132_v47 }
 0x397   : > { %1165 = vst [vmem:[%s2247_s22 + $0xb0] sm:$0xff] %v1133_v45  ;;  %1166 = vst [vmem:[%s2247_s22 + $0xb8] sm:$0xff] %v1134_v53  ;;  %v1104_v31 = vpop.permute.xlu1 %1103 }
 0x398   : > { %v1135_v22 = vsub.f32 %v2057_v60, %v1104_v31  ;;  %v1136_v46 = vsub.f32 %v2063_v1, %v1104_v31  ;;  %v1137_v30 = vsub.f32 %v2415_v48, %v1104_v31  ;;  %v1138_v43 = vsub.f32 %v2070_v13, %v1104_v31 }
 0x39a   : > { %1167 = vst [vmem:[%s2247_s22 + $0xc0] sm:$0xff] %v1135_v22  ;;  %1168 = vst [vmem:[%s2247_s22 + $0xc8] sm:$0xff] %v1136_v46 }
 0x39b   : > { %1169 = vst [vmem:[%s2247_s22 + $0xd0] sm:$0xff] %v1137_v30  ;;  %1170 = vst [vmem:[%s2247_s22 + $0xd8] sm:$0xff] %v1138_v43  ;;  %v1109_v57 = vpop.permute.xlu0 %1108 }
 0x39c   : > { %v1139_v60 = vsub.f32 %v2073_v14, %v1109_v57  ;;  %v1140_v1 = vsub.f32 %v2076_v15, %v1109_v57  ;;  %v1141_v13 = vsub.f32 %v2080_v18, %v1109_v57  ;;  %v1142_v0 = vsub.f32 %v2086_v24, %v1109_v57 }
 0x39e   : > { %1171 = vst [vmem:[%s2247_s22 + $0xe0] sm:$0xff] %v1139_v60  ;;  %1172 = vst [vmem:[%s2247_s22 + $0xe8] sm:$0xff] %v1140_v1 }
 0x39f   : > { %1173 = vst [vmem:[%s2247_s22 + $0xf0] sm:$0xff] %v1141_v13  ;;  %1174 = vst [vmem:[%s2247_s22 + $0xf8] sm:$0xff] %v1142_v0 }
 0x3a0   : > { %1690 = shalt.err (!%p1687_p5)
}
 0x3a1   : > { %s1691_s27 = scalar_lea.hbm %s2306_s8, 4096  ;;  %s1695_s4 = scalar_lea.hbm %s2367_s3, 8192 }
 0x3a2   : > { %p1692_p10 = scmp.ne.s32.totalorder %s2306_s8, %s1691_s27  ;;  %p1696_p6 = scmp.lt.s32.totalorder %s2306_s8, %s2367_s3 }
 0x3a3   : > { %p1697_p12 = scmp.lt.s32.totalorder %s1695_s4, %s1691_s27 }
 0x3a4   : > { %p1693_p1 = pnand %p1692_p10, %p1891_p7 }
 0x3a5   : > { %p1698_p3 = por %p1697_p12, %p1696_p6 }
 0x3a6   : > { %p1694_p4 = pneg %p1693_p1 }
 0x3a8   : > { %p1699_p8 = pnand %p1698_p3, %p1694_p4 }
 0x3aa   : > { %1702 = shalt.err (!%p1699_p8)
}
 0x3ab   : > { %s1774_s22 = smov 512   ;;  %s1775_s24 = smov 32  }
 0x3ac   : > { %1365 = dma.vmem_to_hbm [thread:$0]  (%p1891_p7), %s2308_s5, 4096, %s2306_s8, %s1176_s15, %s1774_s22, %s1774_s22, %s1775_s24  }
 0x3ad PF: > { %s1205_s7 = sand.u32 1, %s1741_s12   ;;  %p2416_p9 = scmp.ne.s32.totalorder %s2383_s23, 0 }
 0x3ae   : > { %p2417_p11 = scmp.ge.s32.totalorder %s1761_s17, 2  ;;  %s1206_s21 = scalar_lea.sflag [#allocation6], %s1205_s7 }
 0x3b0   : > { %p1379_p2 = pnand %p2417_p11, %p2416_p9 }
 0x3b2   : > { %p1380_p13 = pneg %p1379_p2 }
 0x3b4   : > { %1736 = dma.done.wait (%p1380_p13), %s1206_s21, 4096  }
 0x3b5   : > { %1738 = vsyncadd (%p1380_p13), %s1206_s21, 4294963200  ;;  %s20_s17 = sadd.s32 1, %s1761_s17   ;;  %s2418_s12 = smov %s1745_s13 }
 0x3b6   : > { %p17_p0 = scmp.ge.s32.totalorder %s20_s17, 4   ;;  %s2419_s13 = smov %s1749_s14 }
 0x3b7   : > { %s2420_s14 = smov %s1900_s29  ;;  %s2421_s15 = smov %s1757_s16 }
 0x3b8   : > { %s2422_s16 = smov %s2424_s11  ;;  %19 = sbr.rel (!%p17_p0) target bundleno = 7 (0x7), region = 96 }
 0x3bd   :  { %1211 = vsyncpa [#allocation5], 1 }
 0x3be   :  { %1213 = vsyncpa [#allocation5 + $0x1], 1 }
 0x3bf   :  { %1214 = vsyncpa [#allocation8], 1 }
 0x3c0   :  { %1215 = vsyncpa [#allocation6], 1 }
 0x3c1   :  { %1217 = vsyncpa [#allocation6 + $0x1], 1 }

</bundles_post_ra>
